<compile_context>
chip_gen: v7x
topology: tpu7x:2x2x1
jax: 0.10.0
libtpu: 0.0.40
codegen_flags: <defaults>
</compile_context>

<pallas_src>
import functools

import jax
import jax.numpy as jnp
from jax import lax
from jax.experimental import pallas as pl
from jax.experimental.pallas import tpu as pltpu

EPS_BN = 1e-5


def nonlocal_kernel(x_ref, x4_ref, wth_ref, bth_ref, wpg_ref, bpg_ref,
                    ww_ref, bw_ref, bn_ref, out_ref,
                    *, inter_channels, matmul_dtype):
    # x_ref   : (1, C, tn)      x tile, channels-major (spatial on lanes)
    # x4_ref  : (1, 4, C, N2)   x re-indexed by 2x2-window offset, N2 = H*W/4
    # wth     : (IC, C)  pre-scaled by 1/N2      bth : (IC, 1)  pre-scaled
    # wpg     : (2*IC, C) = [w_phi; w_g]         bpg : (2*IC, 1)
    # ww      : (C, IC)                          bw  : (C, 1)
    # bn      : (C, 4)  columns = [gamma, beta, running_mean, running_var]
    ic = inter_channels
    x_t = x_ref[0]                                                  # (C, tn)

    # theta (channels-major); the f/N2 normalization is folded into wth/bth.
    theta = jnp.dot(wth_ref[...], x_t,
                    preferred_element_type=jnp.float32) + bth_ref[...]  # (IC, tn)

    # Fused phi/g 1x1 conv followed by 2x2 max-pool: pool == elementwise max
    # over the 4 window-offset sub-grids; bias is offset-independent so it is
    # added after the max.
    wpg = wpg_ref[...]
    pg = jnp.dot(wpg, x4_ref[0, 0], preferred_element_type=jnp.float32)
    for k in range(1, 4):
        pg = jnp.maximum(
            pg, jnp.dot(wpg, x4_ref[0, k], preferred_element_type=jnp.float32))
    pg = pg + bpg_ref[...]                                          # (2*IC, N2)
    phi = pg[:ic]                                                   # (IC, N2)
    g = pg[ic:]                                                     # (IC, N2)

    # fT[m, n] = f_div_C[n, m] = sum_i phi[i, m] * theta[i, n]  -> (N2, tn)
    ft = lax.dot_general(phi.astype(matmul_dtype), theta.astype(matmul_dtype),
                         (((0,), (0,)), ((), ())),
                         preferred_element_type=jnp.float32)
    # y (channels-major) = g @ fT : (IC, tn)
    y = jnp.dot(g.astype(matmul_dtype), ft.astype(matmul_dtype),
                preferred_element_type=jnp.float32)
    # W(y): 1x1 conv back to C channels, produced directly in (C, tn) layout.
    wy = jnp.dot(ww_ref[...], y,
                 preferred_element_type=jnp.float32) + bw_ref[...]  # (C, tn)

    # BatchNorm2d (eval mode, running statistics) + residual.
    # TODO(synk): training-mode batch statistics are not reproduced.
    bn = bn_ref[...]
    scale = bn[:, 0:1] * lax.rsqrt(bn[:, 3:4] + EPS_BN)
    z = (wy - bn[:, 2:3]) * scale + bn[:, 1:2] + x_t
    out_ref[0] = z.astype(out_ref.dtype)


def nonlocal_pallas(x, params, *, matmul_dtype=jnp.bfloat16, tile_n=None):
    B, C, H, W = x.shape
    assert H % 2 == 0 and W % 2 == 0, "sub_sample=True needs even H, W"
    IC = params["w_theta"].shape[0]
    Hp, Wp = H // 2, W // 2
    N, N2 = H * W, Hp * Wp

    if tile_n is None:
        tile_n = N
        for cand in (512, 256, 128):
            if N % cand == 0:
                tile_n = cand
                break
    assert N % tile_n == 0 and (tile_n == N or tile_n % 128 == 0)
    n_tiles = N // tile_n

    # Wrapper is layout plumbing only (no compute hoisted out of the kernel).
    x_cn = x.reshape(B, C, N)
    # x4[b, dy*2+dx, c, i*Wp+j] = x[b, c, 2i+dy, 2j+dx]
    x4 = (x.reshape(B, C, Hp, 2, Wp, 2)
           .transpose(0, 3, 5, 1, 2, 4)
           .reshape(B, 4, C, N2))

    inv_n2 = 1.0 / N2                       # fold f / N normalization into theta
    wth = (params["w_theta"] * inv_n2).astype(jnp.float32)            # (IC, C)
    bth = (params["b_theta"] * inv_n2).reshape(IC, 1).astype(jnp.float32)
    wpg = jnp.concatenate([params["w_phi"], params["w_g"]], axis=0)   # (2IC, C)
    bpg = jnp.concatenate([params["b_phi"], params["b_g"]], axis=0).reshape(2 * IC, 1)
    ww = params["w_w"]                                                # (C, IC)
    bw = params["b_w"].reshape(C, 1)
    bn = jnp.stack([params["bn_gamma"], params["bn_beta"],
                    params["bn_mean"], params["bn_var"]], axis=1)     # (C, 4)

    # Explicit scoped-VMEM budget: double-buffered blocks + resident params +
    # live intermediates, 2x headroom, clamped to [32 MiB, 64 MiB]
    # (64 MiB == v7x physical VMEM; v5e/v6e have 128 MiB).
    fp = 4 * (2 * C * tile_n + 2 * 4 * C * N2 + 2 * C * tile_n
              + 2 * (3 * IC * C + 3 * IC + C * IC + C + 4 * C)
              + 2 * IC * tile_n + 2 * IC * N2 + 2 * N2 * tile_n + C * tile_n)
    vmem_limit = int(min(max(2 * fp, 32 << 20), 64 << 20))

    kernel = functools.partial(nonlocal_kernel,
                               inter_channels=IC, matmul_dtype=matmul_dtype)
    out = pl.pallas_call(
        kernel,
        out_shape=jax.ShapeDtypeStruct((B, C, N), jnp.float32),
        grid=(B, n_tiles),
        in_specs=[
            pl.BlockSpec((1, C, tile_n), lambda b, n: (b, 0, n)),
            pl.BlockSpec((1, 4, C, N2), lambda b, n: (b, 0, 0, 0)),
            pl.BlockSpec((IC, C), lambda b, n: (0, 0)),
            pl.BlockSpec((IC, 1), lambda b, n: (0, 0)),
            pl.BlockSpec((2 * IC, C), lambda b, n: (0, 0)),
            pl.BlockSpec((2 * IC, 1), lambda b, n: (0, 0)),
            pl.BlockSpec((C, IC), lambda b, n: (0, 0)),
            pl.BlockSpec((C, 1), lambda b, n: (0, 0)),
            pl.BlockSpec((C, 4), lambda b, n: (0, 0)),
        ],
        out_specs=pl.BlockSpec((1, C, tile_n), lambda b, n: (b, 0, n)),
        compiler_params=pltpu.CompilerParams(
            dimension_semantics=("parallel", "parallel"),
            vmem_limit_bytes=vmem_limit),
    )(x_cn, x4, wth, bth, wpg, bpg, ww, bw, bn)
    return out.reshape(B, C, H, W)


def nonlocal_ref(x, params):
    # Pure-JAX reference mirroring the PyTorch forward (eval-mode BN).
    B, C, H, W = x.shape
    IC = params["w_theta"].shape[0]

    def conv1x1(inp, w, b):
        w4 = w.reshape(w.shape[0], w.shape[1], 1, 1)
        out = lax.conv_general_dilated(
            inp, w4, window_strides=(1, 1), padding="VALID",
            dimension_numbers=("NCHW", "OIHW", "NCHW"))
        return out + b.reshape(1, -1, 1, 1)

    def maxpool2(inp):
        b, c, h, w = inp.shape
        return inp.reshape(b, c, h // 2, 2, w // 2, 2).max(axis=(3, 5))

    g_x = maxpool2(conv1x1(x, params["w_g"], params["b_g"]))
    phi_x = maxpool2(conv1x1(x, params["w_phi"], params["b_phi"]))
    theta_x = conv1x1(x, params["w_theta"], params["b_theta"])

    gx = g_x.reshape(B, IC, -1).transpose(0, 2, 1)        # (B, N2, IC)
    th = theta_x.reshape(B, IC, -1).transpose(0, 2, 1)    # (B, N, IC)
    ph = phi_x.reshape(B, IC, -1)                         # (B, IC, N2)
    f = jnp.einsum("bni,bim->bnm", th, ph)
    f = f / f.shape[-1]
    y = jnp.einsum("bnm,bmi->bni", f, gx)                 # (B, N, IC)
    y = y.transpose(0, 2, 1).reshape(B, IC, H, W)
    wy = conv1x1(y, params["w_w"], params["b_w"])
    gamma = params["bn_gamma"].reshape(1, C, 1, 1)
    beta = params["bn_beta"].reshape(1, C, 1, 1)
    rmean = params["bn_mean"].reshape(1, C, 1, 1)
    rvar = params["bn_var"].reshape(1, C, 1, 1)
    wy = (wy - rmean) * lax.rsqrt(rvar + EPS_BN) * gamma + beta
    return wy + x


if __name__ == "__main__":
    B, C, H, W = 2, 4, 16, 16            # in_channels=4 -> inter_channels=2
    IC = max(C // 2, 1)
    ks = jax.random.split(jax.random.PRNGKey(0), 13)
    x = jax.random.normal(ks[0], (B, C, H, W), jnp.float32)

    params = dict(
        w_theta=jax.random.normal(ks[1], (IC, C), jnp.float32) * 0.3,
        b_theta=jax.random.normal(ks[2], (IC,), jnp.float32) * 0.1,
        w_phi=jax.random.normal(ks[3], (IC, C), jnp.float32) * 0.3,
        b_phi=jax.random.normal(ks[4], (IC,), jnp.float32) * 0.1,
        w_g=jax.random.normal(ks[5], (IC, C), jnp.float32) * 0.3,
        b_g=jax.random.normal(ks[6], (IC,), jnp.float32) * 0.1,
        w_w=jax.random.normal(ks[7], (C, IC), jnp.float32) * 0.3,
        b_w=jax.random.normal(ks[8], (C,), jnp.float32) * 0.1,
        # The module initializes the BN weight/bias to 0 (making W_y == 0 at
        # init); use non-trivial values so the test exercises the full path.
        bn_gamma=jax.random.normal(ks[9], (C,), jnp.float32) * 0.3 + 1.0,
        bn_beta=jax.random.normal(ks[10], (C,), jnp.float32) * 0.1,
        bn_mean=jax.random.normal(ks[11], (C,), jnp.float32) * 0.1,
        bn_var=jnp.abs(jax.random.normal(ks[12], (C,), jnp.float32)) * 0.5 + 0.5,
    )

    ref = nonlocal_ref(x, params)

    # Default path: bf16 MXU operands (f32 accumulation), auto N tile.
    out = jax.block_until_ready(nonlocal_pallas(x, params))
    assert out.shape == x.shape and out.dtype == x.dtype
    err_bf16 = float(jnp.max(jnp.abs(out - ref)))
    if not bool(jnp.allclose(out, ref, atol=3e-2, rtol=2e-2)):
        raise AssertionError(f"bf16 path mismatch vs reference: max abs diff = {err_bf16}")

    # f32-matmul path with an explicit 128-wide N tile (exercises the tiled N axis).
    out32 = jax.block_until_ready(
        nonlocal_pallas(x, params, matmul_dtype=jnp.float32, tile_n=128))
    err_f32 = float(jnp.max(jnp.abs(out32 - ref)))
    if not bool(jnp.allclose(out32, ref, atol=1e-3, rtol=1e-3)):
        raise AssertionError(f"f32 path mismatch vs reference: max abs diff = {err_f32}")

    print("KERNEL_OK")
</pallas_src>

<mosaic_0001>
module attributes {stable_mosaic.version = 11 : i64} {
  func.func @nonlocal_kernel(%arg0: i32, %arg1: i32, %arg2: memref<1x4x256xf32, #tpu.memory_space<vmem>>, %arg3: memref<1x4x4x64xf32, #tpu.memory_space<vmem>>, %arg4: memref<2x4xf32, #tpu.memory_space<vmem>>, %arg5: memref<2x1xf32, #tpu.memory_space<vmem>>, %arg6: memref<4x4xf32, #tpu.memory_space<vmem>>, %arg7: memref<4x1xf32, #tpu.memory_space<vmem>>, %arg8: memref<4x2xf32, #tpu.memory_space<vmem>>, %arg9: memref<4x1xf32, #tpu.memory_space<vmem>>, %arg10: memref<4x4xf32, #tpu.memory_space<vmem>>, %arg11: memref<1x4x256xf32, #tpu.memory_space<vmem>>) attributes {dimension_semantics = [#tpu.dimension_semantics<parallel>, #tpu.dimension_semantics<parallel>], iteration_bounds = array<i64: 2, 1>, scalar_prefetch = 0 : i64, scratch_operands = 0 : i64, tpu.core_type = #tpu.core_type<tc>, window_params = [{transform_indices = @transform_0, window_bounds = array<i64: 1, 4, 256>}, {transform_indices = @transform_1, window_bounds = array<i64: 1, 4, 4, 64>}, {pipeline_mode = #tpu.pipeline_mode<synchronous>, transform_indices = @transform_2, window_bounds = array<i64: 2, 4>}, {pipeline_mode = #tpu.pipeline_mode<synchronous>, transform_indices = @transform_3, window_bounds = array<i64: 2, 1>}, {pipeline_mode = #tpu.pipeline_mode<synchronous>, transform_indices = @transform_4, window_bounds = array<i64: 4, 4>}, {pipeline_mode = #tpu.pipeline_mode<synchronous>, transform_indices = @transform_5, window_bounds = array<i64: 4, 1>}, {pipeline_mode = #tpu.pipeline_mode<synchronous>, transform_indices = @transform_6, window_bounds = array<i64: 4, 2>}, {pipeline_mode = #tpu.pipeline_mode<synchronous>, transform_indices = @transform_7, window_bounds = array<i64: 4, 1>}, {pipeline_mode = #tpu.pipeline_mode<synchronous>, transform_indices = @transform_8, window_bounds = array<i64: 4, 4>}, {transform_indices = @transform_9, window_bounds = array<i64: 1, 4, 256>}]} {
    %c0 = arith.constant 0 : index
    %c0_0 = arith.constant 0 : index
    %c0_1 = arith.constant 0 : index
    %0 = vector.load %arg2[%c0, %c0_0, %c0_1] : memref<1x4x256xf32, #tpu.memory_space<vmem>>, vector<1x4x256xf32>
    %1 = vector.shape_cast %0 : vector<1x4x256xf32> to vector<4x256xf32>
    %c0_2 = arith.constant 0 : index
    %c0_3 = arith.constant 0 : index
    %2 = vector.load %arg4[%c0_2, %c0_3] : memref<2x4xf32, #tpu.memory_space<vmem>>, vector<2x4xf32>
    %cst = arith.constant dense<0.000000e+00> : vector<2x256xf32>
    %3 = tpu.matmul %2, %1, %cst {dimension_numbers = #tpu.dot_dimension_numbers<[1], [0], [0], [1], [0, 0, 1, 1], [], []>} : vector<2x4xf32>, vector<4x256xf32>, vector<2x256xf32> -> vector<2x256xf32>
    %c0_4 = arith.constant 0 : index
    %c0_5 = arith.constant 0 : index
    %4 = vector.load %arg5[%c0_4, %c0_5] : memref<2x1xf32, #tpu.memory_space<vmem>>, vector<2x1xf32>
    %5 = vector.broadcast %4 : vector<2x1xf32> to vector<2x256xf32>
    %6 = arith.addf %3, %5 : vector<2x256xf32>
    %c0_6 = arith.constant 0 : index
    %c0_7 = arith.constant 0 : index
    %7 = vector.load %arg6[%c0_6, %c0_7] : memref<4x4xf32, #tpu.memory_space<vmem>>, vector<4x4xf32>
    %c0_8 = arith.constant 0 : index
    %c0_9 = arith.constant 0 : index
    %c0_10 = arith.constant 0 : index
    %c0_11 = arith.constant 0 : index
    %8 = vector.load %arg3[%c0_8, %c0_9, %c0_10, %c0_11] : memref<1x4x4x64xf32, #tpu.memory_space<vmem>>, vector<1x1x4x64xf32>
    %9 = vector.shape_cast %8 : vector<1x1x4x64xf32> to vector<4x64xf32>
    %cst_12 = arith.constant dense<0.000000e+00> : vector<4x64xf32>
    %10 = tpu.matmul %7, %9, %cst_12 {dimension_numbers = #tpu.dot_dimension_numbers<[1], [0], [0], [1], [0, 0, 1, 1], [], []>} : vector<4x4xf32>, vector<4x64xf32>, vector<4x64xf32> -> vector<4x64xf32>
    %c0_13 = arith.constant 0 : index
    %c1 = arith.constant 1 : index
    %c0_14 = arith.constant 0 : index
    %c0_15 = arith.constant 0 : index
    %11 = vector.load %arg3[%c0_13, %c1, %c0_14, %c0_15] : memref<1x4x4x64xf32, #tpu.memory_space<vmem>>, vector<1x1x4x64xf32>
    %12 = vector.shape_cast %11 : vector<1x1x4x64xf32> to vector<4x64xf32>
    %cst_16 = arith.constant dense<0.000000e+00> : vector<4x64xf32>
    %13 = tpu.matmul %7, %12, %cst_16 {dimension_numbers = #tpu.dot_dimension_numbers<[1], [0], [0], [1], [0, 0, 1, 1], [], []>} : vector<4x4xf32>, vector<4x64xf32>, vector<4x64xf32> -> vector<4x64xf32>
    %14 = arith.maximumf %10, %13 : vector<4x64xf32>
    %c0_17 = arith.constant 0 : index
    %c2 = arith.constant 2 : index
    %c0_18 = arith.constant 0 : index
    %c0_19 = arith.constant 0 : index
    %15 = vector.load %arg3[%c0_17, %c2, %c0_18, %c0_19] : memref<1x4x4x64xf32, #tpu.memory_space<vmem>>, vector<1x1x4x64xf32>
    %16 = vector.shape_cast %15 : vector<1x1x4x64xf32> to vector<4x64xf32>
    %cst_20 = arith.constant dense<0.000000e+00> : vector<4x64xf32>
    %17 = tpu.matmul %7, %16, %cst_20 {dimension_numbers = #tpu.dot_dimension_numbers<[1], [0], [0], [1], [0, 0, 1, 1], [], []>} : vector<4x4xf32>, vector<4x64xf32>, vector<4x64xf32> -> vector<4x64xf32>
    %18 = arith.maximumf %14, %17 : vector<4x64xf32>
    %c0_21 = arith.constant 0 : index
    %c3 = arith.constant 3 : index
    %c0_22 = arith.constant 0 : index
    %c0_23 = arith.constant 0 : index
    %19 = vector.load %arg3[%c0_21, %c3, %c0_22, %c0_23] : memref<1x4x4x64xf32, #tpu.memory_space<vmem>>, vector<1x1x4x64xf32>
    %20 = vector.shape_cast %19 : vector<1x1x4x64xf32> to vector<4x64xf32>
    %cst_24 = arith.constant dense<0.000000e+00> : vector<4x64xf32>
    %21 = tpu.matmul %7, %20, %cst_24 {dimension_numbers = #tpu.dot_dimension_numbers<[1], [0], [0], [1], [0, 0, 1, 1], [], []>} : vector<4x4xf32>, vector<4x64xf32>, vector<4x64xf32> -> vector<4x64xf32>
    %22 = arith.maximumf %18, %21 : vector<4x64xf32>
    %c0_25 = arith.constant 0 : index
    %c0_26 = arith.constant 0 : index
    %23 = vector.load %arg7[%c0_25, %c0_26] : memref<4x1xf32, #tpu.memory_space<vmem>>, vector<4x1xf32>
    %24 = vector.broadcast %23 : vector<4x1xf32> to vector<4x64xf32>
    %25 = arith.addf %22, %24 : vector<4x64xf32>
    %26 = vector.extract_strided_slice %25 {offsets = [0, 0], sizes = [2, 64], strides = [1, 1]} : vector<4x64xf32> to vector<2x64xf32>
    %27 = vector.extract_strided_slice %25 {offsets = [2, 0], sizes = [2, 64], strides = [1, 1]} : vector<4x64xf32> to vector<2x64xf32>
    %28 = arith.truncf %26 : vector<2x64xf32> to vector<2x64xbf16>
    %29 = arith.truncf %6 : vector<2x256xf32> to vector<2x256xbf16>
    %cst_27 = arith.constant dense<0.000000e+00> : vector<64x256xf32>
    %30 = tpu.matmul %28, %29, %cst_27 {dimension_numbers = #tpu.dot_dimension_numbers<[0], [0], [1], [1], [0, 1, 1, 1], [], []>} : vector<2x64xbf16>, vector<2x256xbf16>, vector<64x256xf32> -> vector<64x256xf32>
    %31 = arith.truncf %27 : vector<2x64xf32> to vector<2x64xbf16>
    %32 = arith.truncf %30 : vector<64x256xf32> to vector<64x256xbf16>
    %cst_28 = arith.constant dense<0.000000e+00> : vector<2x256xf32>
    %33 = tpu.matmul %31, %32, %cst_28 {dimension_numbers = #tpu.dot_dimension_numbers<[1], [0], [0], [1], [0, 0, 1, 1], [], []>} : vector<2x64xbf16>, vector<64x256xbf16>, vector<2x256xf32> -> vector<2x256xf32>
    %c0_29 = arith.constant 0 : index
    %c0_30 = arith.constant 0 : index
    %34 = vector.load %arg8[%c0_29, %c0_30] : memref<4x2xf32, #tpu.memory_space<vmem>>, vector<4x2xf32>
    %cst_31 = arith.constant dense<0.000000e+00> : vector<4x256xf32>
    %35 = tpu.matmul %34, %33, %cst_31 {dimension_numbers = #tpu.dot_dimension_numbers<[1], [0], [0], [1], [0, 0, 1, 1], [], []>} : vector<4x2xf32>, vector<2x256xf32>, vector<4x256xf32> -> vector<4x256xf32>
    %c0_32 = arith.constant 0 : index
    %c0_33 = arith.constant 0 : index
    %36 = vector.load %arg9[%c0_32, %c0_33] : memref<4x1xf32, #tpu.memory_space<vmem>>, vector<4x1xf32>
    %37 = vector.broadcast %36 : vector<4x1xf32> to vector<4x256xf32>
    %38 = arith.addf %35, %37 : vector<4x256xf32>
    %c0_34 = arith.constant 0 : index
    %c0_35 = arith.constant 0 : index
    %39 = vector.load %arg10[%c0_34, %c0_35] : memref<4x4xf32, #tpu.memory_space<vmem>>, vector<4x4xf32>
    %40 = vector.extract_strided_slice %39 {offsets = [0, 0], sizes = [4, 1], strides = [1, 1]} : vector<4x4xf32> to vector<4x1xf32>
    %41 = vector.extract_strided_slice %39 {offsets = [0, 3], sizes = [4, 1], strides = [1, 1]} : vector<4x4xf32> to vector<4x1xf32>
    %cst_36 = arith.constant 9.99999974E-6 : f32
    %42 = vector.broadcast %cst_36 : f32 to vector<4x1xf32>
    %43 = arith.addf %41, %42 : vector<4x1xf32>
    %44 = math.rsqrt %43 : vector<4x1xf32>
    %45 = arith.mulf %40, %44 : vector<4x1xf32>
    %46 = vector.extract_strided_slice %39 {offsets = [0, 2], sizes = [4, 1], strides = [1, 1]} : vector<4x4xf32> to vector<4x1xf32>
    %47 = vector.broadcast %46 : vector<4x1xf32> to vector<4x256xf32>
    %48 = arith.subf %38, %47 : vector<4x256xf32>
    %49 = vector.broadcast %45 : vector<4x1xf32> to vector<4x256xf32>
    %50 = arith.mulf %48, %49 : vector<4x256xf32>
    %51 = vector.extract_strided_slice %39 {offsets = [0, 1], sizes = [4, 1], strides = [1, 1]} : vector<4x4xf32> to vector<4x1xf32>
    %52 = vector.broadcast %51 : vector<4x1xf32> to vector<4x256xf32>
    %53 = arith.addf %50, %52 : vector<4x256xf32>
    %54 = arith.addf %53, %1 : vector<4x256xf32>
    %c0_37 = arith.constant 0 : index
    %c0_38 = arith.constant 0 : index
    %c0_39 = arith.constant 0 : index
    %55 = vector.load %arg11[%c0_37, %c0_38, %c0_39] : memref<1x4x256xf32, #tpu.memory_space<vmem>>, vector<1x4x256xf32>
    %56 = vector.shape_cast %55 : vector<1x4x256xf32> to vector<4x256xf32>
    %57 = vector.shape_cast %54 : vector<4x256xf32> to vector<1x4x256xf32>
    tpu.vector_store %arg11[%c0_37, %c0_38, %c0_39], %57 {strides = array<i32>} : memref<1x4x256xf32, #tpu.memory_space<vmem>>, vector<1x4x256xf32>,
    return
  }
  func.func @transform_0(%arg0: i32, %arg1: i32) -> (i32, i32, i32) {
    %c0_i32 = arith.constant 0 : i32
    %c0_i32_0 = arith.constant 0 : i32
    return %arg0, %c0_i32, %arg1 : i32, i32, i32
  }
  func.func @transform_1(%arg0: i32, %arg1: i32) -> (i32, i32, i32, i32) {
    %c0_i32 = arith.constant 0 : i32
    %c0_i32_0 = arith.constant 0 : i32
    %c0_i32_1 = arith.constant 0 : i32
    %c0_i32_2 = arith.constant 0 : i32
    return %arg0, %c0_i32, %c0_i32_0, %c0_i32_1 : i32, i32, i32, i32
  }
  func.func @transform_2(%arg0: i32, %arg1: i32) -> (i32, i32) {
    %c0_i32 = arith.constant 0 : i32
    %c0_i32_0 = arith.constant 0 : i32
    %c0_i32_1 = arith.constant 0 : i32
    return %c0_i32, %c0_i32_0 : i32, i32
  }
  func.func @transform_3(%arg0: i32, %arg1: i32) -> (i32, i32) {
    %c0_i32 = arith.constant 0 : i32
    %c0_i32_0 = arith.constant 0 : i32
    %c0_i32_1 = arith.constant 0 : i32
    return %c0_i32, %c0_i32_0 : i32, i32
  }
  func.func @transform_4(%arg0: i32, %arg1: i32) -> (i32, i32) {
    %c0_i32 = arith.constant 0 : i32
    %c0_i32_0 = arith.constant 0 : i32
    %c0_i32_1 = arith.constant 0 : i32
    return %c0_i32, %c0_i32_0 : i32, i32
  }
  func.func @transform_5(%arg0: i32, %arg1: i32) -> (i32, i32) {
    %c0_i32 = arith.constant 0 : i32
    %c0_i32_0 = arith.constant 0 : i32
    %c0_i32_1 = arith.constant 0 : i32
    return %c0_i32, %c0_i32_0 : i32, i32
  }
  func.func @transform_6(%arg0: i32, %arg1: i32) -> (i32, i32) {
    %c0_i32 = arith.constant 0 : i32
    %c0_i32_0 = arith.constant 0 : i32
    %c0_i32_1 = arith.constant 0 : i32
    return %c0_i32, %c0_i32_0 : i32, i32
  }
  func.func @transform_7(%arg0: i32, %arg1: i32) -> (i32, i32) {
    %c0_i32 = arith.constant 0 : i32
    %c0_i32_0 = arith.constant 0 : i32
    %c0_i32_1 = arith.constant 0 : i32
    return %c0_i32, %c0_i32_0 : i32, i32
  }
  func.func @transform_8(%arg0: i32, %arg1: i32) -> (i32, i32) {
    %c0_i32 = arith.constant 0 : i32
    %c0_i32_0 = arith.constant 0 : i32
    %c0_i32_1 = arith.constant 0 : i32
    return %c0_i32, %c0_i32_0 : i32, i32
  }
  func.func @transform_9(%arg0: i32, %arg1: i32) -> (i32, i32, i32) {
    %c0_i32 = arith.constant 0 : i32
    %c0_i32_0 = arith.constant 0 : i32
    return %arg0, %c0_i32, %arg1 : i32, i32, i32
  }
}

</mosaic_0001>

<bundles_post_ra>
// kernel: tpu_custom_call.1
= control target key start
LH: loop header
LB: loop body
LE: loop exit
PB: predicated region body
PF: predicated region fallthrough
CT: control target
= control target key end

     0   :  { %s1901_s0 = inlined_call_operand.vmem [shape: f32[2,4,256], index: 0, kind: input, shape index: {}]   ;;  %s1902_s1 = inlined_call_operand.hbm [shape: f32[2,4,4,64], index: 1, kind: input, shape index: {}]   ;;  %s1903_s2 = inlined_call_operand.hbm [shape: f32[2,4], index: 2, kind: input, shape index: {}]   ;;  %s1904_s3 = inlined_call_operand.vmem [shape: f32[2,1], index: 3, kind: input, shape index: {}]   ;;  %s1905_s4 = inlined_call_operand.vmem [shape: f32[4,4], index: 4, kind: input, shape index: {}]   ;;  %s1906_s5 = inlined_call_operand.vmem [shape: f32[4,1], index: 5, kind: input, shape index: {}]   ;;  %s1907_s6 = inlined_call_operand.vmem [shape: f32[4,2], index: 6, kind: input, shape index: {}]   ;;  %s1908_s7 = inlined_call_operand.vmem [shape: f32[4,1], index: 7, kind: input, shape index: {}]   ;;  %s1909_s8 = inlined_call_operand.vmem [shape: f32[4,4], index: 8, kind: input, shape index: {}]   ;;  %s1910_s9 = inlined_call_operand.hbm [shape: f32[2,4,256], index: 9, kind: output, shape index: {}]  }
   0x1   :  { %1922 = sst [smem:[#allocation14_spill]] %s1910_s9 }
   0x2   :  { %14 = vsyncpa [#allocation3], 0 }
   0x3   :  { %16 = vsyncpa [#allocation3 + $0x1], 0 }
   0x4   :  { %17 = vsyncpa [#allocation6], 0 }
   0x5   :  { %18 = vsyncpa [#allocation4], 0 }
   0x6   :  { %20 = vsyncpa [#allocation4 + $0x1], 0  ;;  %s1605_s30 = smov 0   ;;  %s1607_s10 = smov 0  }
   0x7   :  { %s1609_s11 = smov 0   ;;  %s1611_s12 = smov 0  }
   0x8   :  { %s1613_s13 = smov 0   ;;  %s1615_s14 = smov 0  }
   0x9 LB: > { %1923 = sst [smem:[#allocation11_spill]] %s1522_s30  ;;  %s1236_s15 = sadd.s32 4294967295, %s1542_s14   ;;  %s1542_s14 = sphi %s1615_s14, %s26_s14   ;;  %s1538_s13 = sphi %s1613_s13, %s1952_s13   ;;  %s1534_s12 = sphi %s1611_s12, %s1951_s12   ;;  %s1530_s11 = sphi %s1609_s11, %s1950_s11   ;;  %s1526_s10 = sphi %s1607_s10, %s1949_s10   ;;  %s1522_s30 = sphi %s1605_s30, %s1948_s30  }
   0xa   : > { %1924 = sst [smem:[#allocation12_spill]] %s1542_s14  ;;  %s1237_s16 = sadd.s32 4294967294, %s1542_s14  }
   0xb   : > { %p80_p0 = scmp.ne.s32.totalorder %s1530_s11, %s1526_s10  ;;  %p81_p1 = scmp.eq.s32.totalorder %s1542_s14, 0 }
   0xc   : > { %p86_p2 = scmp.ne.s32.totalorder %s1526_s10, %s1522_s30  ;;  %p1643_p3 = scmp.eq.s32.totalorder %s1236_s15, 0 }
   0xd   : > { %p259_p4 = scmp.eq.s32.totalorder %s1236_s15, 1  ;;  %p1647_p5 = por %p81_p1, %p80_p0 }
   0xe   : > { %s1925_s18 = scalar_select %p1643_p3, 1, 0 }
   0xf   : > { %p265_p6 = scmp.eq.s32.totalorder %s1237_s16, 1  ;;  %p1653_p7 = por %p1643_p3, %p86_p2 }
  0x10   : > { %p1657_p8 = por %p259_p4, %p80_p0  ;;  %p1238_p10 = scmp.ge.s32.totalorder %s1542_s14, 1 }
  0x11   : > { %s1927_s20 = scalar_select %p1653_p7, 1, 0 }
  0x12   : > { %s1928_s21 = scalar_select %p1657_p8, 1, 0 }
  0x13   : > { %p1661_p9 = por %p265_p6, %p86_p2  ;;  %p272_p11 = scmp.lt.s32.totalorder %s1542_s14, 3 }
  0x14   : > { %s1544_s24 = smov [#allocation5]   ;;  %p1330_p1 = scmp.lt.s32.totalorder %s1542_s14, 2 }
  0x15   : > { %s1929_s22 = scalar_select %p1661_p9, 1, 0 }
  0x16   : > { %p1668_p13 = pnand %p1238_p10, %p272_p11  ;;  %s285_s25 = sshll.u32 %s1544_s24, 4  ;;  %s286_s25 = int_to_ptr.vmem [resolvable:$true] %s285_s25 }
  0x17   : > { %1930 = sst [smem:[#allocation13_spill]] %s1929_s22  ;;  %p1677_p4 = pnand %p1330_p1, %p1647_p5 }
  0x18   : > { %s1931_s23 = scalar_select %p1668_p13, 1, 0 }
  0x19   : > { %p1317_p0 = pneg %p1668_p13  ;;  %s38_s28 = sadd.s32 1, %s1538_s13 }
  0x1a   : > { %s1932_s26 = scalar_select %p1677_p4, 1, 0 }
  0x1b   : > { %p1683_p2 = pnand %p1317_p0, %p1643_p3  ;;  %p1688_p6 = scmp.ge.s32.totalorder %s38_s28, 2 }
  0x1c   : > { %s327_s15 = sand.u32 1, %s1530_s11   ;;  %s1398_s19 = scalar_lea.hbm %s1903_s2, 32 }
  0x1d   : > { %s1934_s29 = scalar_select %p1688_p6, 1, 0 }
  0x1e   : > { %p1399_p5 = scmp.ne.s32.totalorder %s1903_s2, %s1398_s19  ;;  %p1400_p10 = pneg %p1683_p2 }
  0x1f   : > { %p1405_p0 = scmp.lt.u32.totalorder %s1398_s19, %s1903_s2 }
  0x20   : > { %p1401_p11 = pnand %p1400_p10, %p1399_p5 }
  0x22   : > { %p1402_p1 = pneg %p1401_p11 }
  0x24   : > { %p1407_p12 = pnand %p1405_p0, %p1402_p1 }
  0x26   : > { %1410 = shalt.err (!%p1407_p12)
}
  0x27   : > { %s1411_s9 = scalar_lea.vmem %s286_s25, 32  ;;  %p1419_p7 = scmp.lt.s32.totalorder %s286_s25, %s286_s25 }
  0x28   : > { %p1412_p9 = scmp.ne.s32.totalorder %s286_s25, %s1411_s9  ;;  %p1420_p13 = scmp.lt.s32.totalorder %s1411_s9, %s1411_s9 }
  0x2a   : > { %p1414_p8 = pnand %p1412_p9, %p1400_p10  ;;  %p1421_p4 = por %p1420_p13, %p1419_p7 }
  0x2c   : > { %p1415_p3 = pneg %p1414_p8 }
  0x2e   : > { %p1422_p6 = pnand %p1421_p4, %p1415_p3 }
  0x30   : > { %1425 = shalt.err (!%p1422_p6)
}
  0x31   : > { %1320 = dma.hbm_to_vmem [thread:$0]  (!%p1683_p2), %s1903_s2, 32, %s286_s25, [#allocation6]  }
  0x32   : > { %p1935_p9 = scmp.ne.s32.totalorder %s1934_s29, 0  ;;  %s1241_s9 = sshll.u32 %s327_s15, 4 }
  0x33   : > { %s1278_s22 = sshll.u32 %s1538_s13, 8  ;;  %s331_s19 = scalar_lea.vmem [#allocation2], %s1241_s9 }
  0x34   : > { %s1954_s28 = smov (%p1935_p9, %s38_s28), 0  ;;  %s1719_s24 = scalar_lea.hbm %s1902_s1, %s1278_s22 }
  0x35   : > { %s70_s30 = ssub.s32 %s1538_s13, %s1954_s28  ;;  %s338_s14 = sshll.u32 %s331_s19, 4  ;;  %s1726_s14 = int_to_ptr.vmem [resolvable:$true] %s338_s14 }
  0x36   : > { %p71_p3 = scmp.eq.s32.totalorder %s70_s30, 0  ;;  %s1936_s25 = sadd.s32 1, %s1530_s11 }
  0x37   : > { %s1728_s17 = scalar_lea.sflag [#allocation3], %s327_s15  ;;  %s1426_s30 = scalar_lea.hbm %s1719_s24, 256 }
  0x38   : > { %s1724_s29 = scalar_select %p71_p3, %s1530_s11, %s1936_s25  }
  0x39   : > { %p1427_p7 = scmp.ne.s32.totalorder %s1719_s24, %s1426_s30  ;;  %p1937_p8 = scmp.ne.s32.totalorder %s1932_s26, 0 }
  0x3a   : > { %s1431_s9 = scalar_lea.hbm %s1902_s1, 512  ;;  %p1432_p2 = scmp.lt.u32.totalorder %s1719_s24, %s1902_s1 }
  0x3b   : > { %p1428_p12 = pneg %p1937_p8  ;;  %p1433_p6 = scmp.lt.u32.totalorder %s1431_s9, %s1426_s30 }
  0x3c   : > { %p1435_p10 = scmp.lt.u32.totalorder %s1426_s30, %s1719_s24 }
  0x3d   : > { %p1429_p13 = pnand %p1428_p12, %p1427_p7  ;;  %p1434_p5 = por %p1433_p6, %p1432_p2 }
  0x3f   : > { %p1430_p4 = pneg %p1429_p13  ;;  %p1436_p11 = por %p1435_p10, %p1434_p5 }
  0x41   : > { %p1437_p1 = pnand %p1436_p11, %p1430_p4 }
  0x43   : > { %1440 = shalt.err (!%p1437_p1)
}
  0x44   : > { %s1441_s15 = scalar_lea.vmem %s1726_s14, 256  ;;  %s1545_s25 = smov [#allocation2]  }
  0x45   : > { %p1442_p0 = scmp.ne.s32.totalorder %s1726_s14, %s1441_s15  ;;  %s1446_s22 = sshll.u32 %s1545_s25, 4  ;;  %s1447_s22 = int_to_ptr.vmem [resolvable:$false] %s1446_s22 }
  0x46   : > { %s1448_s27 = scalar_lea.vmem %s1447_s22, 512  ;;  %p1449_p7 = scmp.lt.s32.totalorder %s1726_s14, %s1447_s22 }
  0x47   : > { %p1444_p9 = pnand %p1442_p0, %p1428_p12  ;;  %p1450_p13 = scmp.lt.s32.totalorder %s1448_s27, %s1441_s15 }
  0x49   : > { %p1445_p3 = pneg %p1444_p9  ;;  %p1451_p2 = por %p1450_p13, %p1449_p7 }
  0x4b   : > { %p1452_p6 = pnand %p1451_p2, %p1445_p3 }
  0x4d   : > { %1455 = shalt.err (!%p1452_p6)
}
  0x4e   : > { %s1546_s30 = smov 64   ;;  %s1547_s9 = smov 4  }
  0x4f   : > { %1324 = dma.hbm_to_vmem [thread:$0]  (!%p1937_p8), %s1719_s24, 256, %s1726_s14, %s1728_s17, %s1546_s30, %s1546_s30, %s1547_s9  }
  0x50   : > { %p1938_p12 = scmp.ne.s32.totalorder %s1931_s23, 0 }
  0x51   : > { %s1759_s16 = sand.u32 (!%p1938_p12), 1, %s1526_s10   ;;  %p1939_p4 = scmp.ne.s32.totalorder (!%p1938_p12), %s1927_s20, 0 }
  0x52   : > { %350 = sbr.rel (%p1938_p12) target bundleno = 1132 (0x46c), region = 56  ;;  %s1245_s19 = sshll.u32 (!%p1938_p12), %s1759_s16, 4 }
  0x53   : > { %s353_s15 = scalar_lea.sflag (!%p1938_p12), [#allocation3], %s1759_s16  ;;  %s1763_s25 = scalar_lea.vmem (!%p1938_p12), [#allocation2], %s1245_s19 }
  0x59   : > { %1509 = dma.done.wait (%p1939_p4), %s353_s15, 256  }
  0x5a   : > { %1511 = vsyncadd (%p1939_p4), %s353_s15, 4294967040  ;;  %p1940_p8 = scmp.ne.s32.totalorder %s1925_s18, 0 }
  0x5c   : > { %1513 = dma.done.wait (%p1940_p8), [#allocation6], 32  }
  0x5d   : > { %1515 = vsyncadd (%p1940_p8), [#allocation6], 4294967264  ;;  %p405_p5 = scmp.lt.s32.totalorder %s1534_s12, 1  ;;  %v1548_v0 = vmov 0.0   ;;  %vm1549_vm0 = vmmov 0   ;;  %v1550_v1 = vmov 0  }
  0x5e   : > { %499 = vmatprep.mubr.f32.mxu0 %v1548_v0  ;;  %1289 = vmatprep.subr.mxu1 %v1548_v0  ;;  %vm426_vm1 = vcmask 31744   ;;  %vm430_vm2 = vcmask 1043456   ;;  %v507_v3 = vld [vmem:[%s1763_s25] sm:$0xf]  ;;  %v1258_v6 = vld [vmem:[%s1763_s25 + $0x8] sm:$0xf] }
  0x5f   : > { %s406_s23 = scalar_select %p405_p5, %s1534_s12, 1  ;;  %1291 = vmatprep.mubr.msk.f32.mxu1 %vm1549_vm0, %v1548_v0  ;;  %1390 = vset.pattern.permute.xlu0 %v1550_v1  ;;  %v506_v5 = vld [vmem:[%s1905_s4] sm:$0xf]  ;;  %v1255_v8 = vld [vmem:[%s1763_s25 + $0x4] sm:$0xf]  ;;  %vm851_vm3 = vcmask 1040384  }
  0x60   : > { %1290 = vmatpush3.msk.msra.mxu1 %vm430_vm2, %v507_v3  ;;  %v417_v7 = vld [vmem:[#allocation5] sm:$0x3]  ;;  %v1261_v10 = vld [vmem:[%s1763_s25 + $0xc] sm:$0xf]  ;;  %vm838_vm4 = vcmask 15360   ;;  %s1551_s25 = smov 125  }
  0x61   : > { %s1279_s18 = sshll.u32 %s406_s23, 3  ;;  %1292 = vmatmul.mubr.msk.f32.vlgmr.msra.gmra.mrb[0].mxu1 %vm426_vm1, %v506_v5  ;;  %1299 = vmatprep.subr.mxu1 %v1548_v0  ;;  %v812_v9 = vld [vmem:[%s1906_s5] sm:$0xf]  ;;  %vm941_vm5 = vcmask 523264   ;;  %vm996_vm6 = vcmask 1041408   ;;  %s1280_s14 = sshll.u32 %s1534_s12, 7 }
  0x62   : > { %s412_s24 = scalar_lea.vmem %s1901_s0, %s1279_s18  ;;  %1300 = vmatpush3.msk.msra.mxu1 %vm430_vm2, %v1258_v6  ;;  %1301 = vmatprep.mubr.msk.f32.mxu1 %vm1549_vm0, %v1548_v0  ;;  %v418_v11 = vld [vmem:[%s1904_s3] sm:$0x3]  ;;  %v1552_v6 = vmov 2   ;;  %s1941_s9 = sld [smem:[#allocation14_spill]] }
  0x63   : > { %v1783_v2 = vld [vmem:[%s412_s24] sm:$0xff]  ;;  %815 = vperm.xlu0 %1390, %v812_v9   ;;  %s1247_s24 = sshll.u32 %s1759_s16, 3  ;;  %s1111_s15 = scalar_lea.sflag [#allocation4], %s1759_s16 }
  0x64   : > { %v1788_v4 = vcombine.high %v1783_v2, %v1783_v2  ;;  %v1074_v38 = vld [vmem:[%s1909_s8] sm:$0xf]  ;;  %s403_s17 = scalar_lea.vmem [#allocation7], %s1247_s24  ;;  %p1942_p11 = scmp.ne.s32.totalorder %s1928_s21, 0 }
  0x65   : > { %1302 = vmatmul.mubr.msk.f32.vlgmr.msra.gmra.mrb[2].mxu1 %vm426_vm1, %v506_v5  ;;  %v1075_v39 = vadd.f32 1e-05, %v1074_v38  ;;  %s1127_s22 = sshll.u32 %s403_s17, 4  ;;  %s1554_s12 = smov [#allocation7]   ;;  %s1854_s22 = int_to_ptr.vmem [resolvable:$true] %s1127_s22 }
  0x66   : > { %1250 = vmatprep.subr.msk.mxu0 %vm430_vm2, %v1788_v4  ;;  %890 = vmatprep.mubr.bf16.mxu1 %v1550_v1  ;;  %s1460_s23 = sshll.u32 %s1554_s12, 4  ;;  %s1461_s23 = int_to_ptr.vmem [resolvable:$false] %s1460_s23 }
  0x67   : > { %1251 = vmatpush1.msk.msra.mxu0 %vm430_vm2, %v1783_v2  ;;  %421 = vperm.xlu0 %1390, %v418_v11   ;;  %1396 = vrsqrt.f32 %v1075_v39  ;;  %s1462_s18 = scalar_lea.vmem %s1461_s23, 256  ;;  %p1463_p9 = scmp.lt.s32.totalorder %s1854_s22, %s1461_s23 }
  0x68   : > { %1252 = vmatmul.mubr.msk.f32.vlgmr.msra.gmra.mrb[0].mxu0 %vm426_vm1, %v417_v7  ;;  %1294 = vmatprep.subr.mxu0 %v1548_v0  ;;  %v1553_v7 = vmov 1   ;;  %s1852_s19 = scalar_lea.hbm %s1941_s9, %s1280_s14 }
  0x69   : > { %1295 = vmatpush3.msk.msra.mxu0 %vm430_vm2, %v1255_v8  ;;  %1296 = vmatprep.mubr.msk.f32.mxu0 %vm1549_vm0, %v1548_v0  ;;  %v987_v8 = vld [vmem:[%s1908_s7] sm:$0xf] }
  0x6a   : > { %1304 = vmatprep.subr.mxu0 %v1548_v0 }
  0x6b   : > { %1391 = vset.pattern.permute.xlu0 %v1552_v6 }
  0x6c   : > { %1297 = vmatmul.mubr.msk.f32.vlgmr.msra.gmra.mrb[2].mxu0 %vm426_vm1, %v506_v5  ;;  %1084 = vperm.xlu0 %1391, %v1074_v38  }
  0x6d   : > { %1305 = vmatpush3.msk.msra.mxu0 %vm430_vm2, %v1261_v10  ;;  %1306 = vmatprep.mubr.msk.f32.mxu0 %vm1549_vm0, %v1548_v0 }
  0x70   : > { %1307 = vmatmul.mubr.msk.f32.vlgmr.msra.gmra.mrb[4].mxu0 %vm426_vm1, %v506_v5  ;;  %1392 = vset.pattern.permute.xlu0 %v1550_v1 }
  0x71   : > { %977 = vmatprep.mubr.bf16.mxu0 %v1550_v1  ;;  %v1397_v40 = vpop.eup %1396  ;;  %990 = vperm.xlu0 %1392, %v987_v8  }
  0xe2   : > { %v816_v12 = vpop.permute.xlu0 %815 }
  0xe6   : > { %v422_v14 = vpop.permute.xlu0 %421 }
 0x134   : > { %v580_v13 = vpop.f32.mrb[0].mxu1 }
 0x135   : > { %v1293_v15 = vpop.f32.mrb[1].mxu1 }
 0x136   : > { %v1085_v15 = vpop.permute.xlu0 %1084 }
 0x138   : > { %v731_v20 = vpop.f32.mrb[2].mxu1 }
 0x139   : > { %v1303_v22 = vpop.f32.mrb[3].mxu1 }
 0x13b   : > { %v501_v16 = vpop.f32.mrb[0].mxu0 }
 0x13c   : > { %v502_v17 = vadd.f32 %v501_v16, %v422_v14  ;;  %v503_v18 = vpop.f32.mrb[1].mxu0 }
 0x13d   : > { %v504_v19 = vadd.f32 %v503_v18, %v422_v14 }
 0x13e   : > { %v820_v21 = vpack.c.bf16 %v502_v17, %v502_v17 }
 0x13f   : > { %v821_v23 = vpack.c.bf16 %v504_v19, %v504_v19  ;;  %v655_v24 = vpop.f32.mrb[2].mxu0 }
 0x140   : > { %v853_v25 = vsel %vm851_vm3, %v820_v21, 0  ;;  %v659_v26 = vmax.f32 %v580_v13, %v655_v24  ;;  %v1298_v27 = vpop.f32.mrb[3].mxu0 }
 0x141   : > { %1264 = vmatprep.subr.msk.bf16.mxu1 %vm851_vm3, %v821_v23 }
 0x142   : > { %v735_v28 = vmax.f32 %v659_v26, %v731_v20  ;;  %859 = vmatpush1.bf16.msra.mxu1 %v853_v25 }
 0x143   : > { %v807_v29 = vpop.f32.mrb[4].mxu0 }
 0x144   : > { %v811_v30 = vmax.f32 %v735_v28, %v807_v29  ;;  %v1308_v31 = vpop.f32.mrb[5].mxu0 }
 0x146   : > { %v818_v32 = vadd.f32 %v816_v12, %v811_v30  ;;  %v986_v12 = vld [vmem:[%s1907_s6] sm:$0xf] }
 0x148   : > { %v819_v33 = vpack.c.bf16 %v818_v32, %v818_v32 }
 0x14a   : > { %822 = vxpose.xlu1.c.b16.start.end [1/1] (short) (narrow) %v819_v33, 64  ;;  %v940_v5 = vrot.slane %v819_v33, 1 }
 0x14e   : > { %1393 = vset.pattern.permute.xlu1 %v1553_v7 }
 0x15a   : > { %1078 = vrot.lane.b32.xlu1 %v1397_v40, %s1551_s25  ;;  %s1456_s25 = scalar_lea.vmem %s1854_s22, 128 }
 0x15b   : > { %p1457_p10 = scmp.ne.s32.totalorder %s1854_s22, %s1456_s25  ;;  %p1464_p3 = scmp.lt.s32.totalorder %s1462_s18, %s1456_s25 }
 0x15d   : > { %p1458_p1 = pnand %p1457_p10, %p1942_p11  ;;  %p1465_p7 = por %p1464_p3, %p1463_p9 }
 0x15e   : > { %1097 = vperm.xlu1 %1393, %v1074_v38  }
 0x15f   : > { %p1459_p0 = pneg %p1458_p1 }
 0x161   : > { %p1466_p13 = pnand %p1465_p7, %p1459_p0 }
 0x1b0   : > { %v830_v34 = vpop.trf.xlu1 }
 0x1b1   : > { %1265 = vmatmul.mubr.msk.bf16.vlgmr.msra.gmra.mrb[4].mxu1 %vm838_vm4, %v830_v34 }
 0x1b2   : > { %900 = vmatprep.mubr.bf16.mxu1 %v1550_v1 }
 0x1b4   : > { %v831_v35 = vpop.trf.xlu1 }
 0x1b8   : > { %v832_v36 = vpop.trf.xlu1 }
 0x1b9   : > { %1266 = vmatmul.mubr.msk.bf16.gmra.mrb[8].mxu1 %vm838_vm4, %v831_v35 }
 0x1ba   : > { %910 = vmatprep.mubr.bf16.mxu1 %v1550_v1 }
 0x1bc   : > { %v833_v37 = vpop.trf.xlu1 }
 0x1c1   : > { %1267 = vmatmul.mubr.msk.bf16.gmra.mrb[12].mxu1 %vm838_vm4, %v832_v36 }
 0x1c2   : > { %920 = vmatprep.mubr.bf16.mxu1 %v1550_v1  ;;  %v991_v1 = vpop.permute.xlu0 %990 }
 0x1c9   : > { %1268 = vmatmul.mubr.msk.bf16.gmra.mrb[16].mxu1 %vm838_vm4, %v833_v37 }
 0x1cc   : > { %v1079_v9 = vpop.permute.xlu1 %1078 }
 0x1cd   : > { %v1081_v10 = vmul.f32 %v1079_v9, %v1074_v38 }
 0x1cf   : > { %1091 = vperm.xlu0 %1392, %v1081_v10  }
 0x1d3   : > { %1394 = vset.pattern.permute.xlu0 %v1553_v7 }
 0x1dd   : > { %v1098_v23 = vpop.permute.xlu1 %1097 }
 0x24e   : > { %v1092_v21 = vpop.permute.xlu0 %1091 }
 0x284   : > { %v892_v41 = vpop.f32.mrb[4].mxu1 }
 0x285   : > { %v894_v42 = vpop.f32.mrb[5].mxu1 }
 0x286   : > { %v896_v43 = vpop.f32.mrb[6].mxu1 }
 0x287   : > { %v931_v44 = vpack.c.bf16 %v896_v43, %v892_v41  ;;  %v898_v45 = vpop.f32.mrb[7].mxu1 }
 0x288   : > { %v932_v46 = vpack.c.bf16 %v898_v45, %v894_v42 }
 0x28a   : > { %945 = vmatprep.subr.bf16.mxu0 %v932_v46 }
 0x28b   : > { %946 = vmatpush1.bf16.msra.mxu0 %v931_v44 }
 0x28c   : > { %v902_v47 = vpop.f32.mrb[8].mxu1 }
 0x28d   : > { %v904_v48 = vpop.f32.mrb[9].mxu1 }
 0x28e   : > { %v906_v49 = vpop.f32.mrb[10].mxu1 }
 0x28f   : > { %v933_v50 = vpack.c.bf16 %v906_v49, %v902_v47  ;;  %v908_v51 = vpop.f32.mrb[11].mxu1 }
 0x290   : > { %v934_v52 = vpack.c.bf16 %v908_v51, %v904_v48 }
 0x292   : > { %947 = vmatprep.subr.bf16.mxu0 %v934_v52 }
 0x293   : > { %948 = vmatpush1.bf16.msra.mxu0 %v933_v50 }
 0x294   : > { %v912_v53 = vpop.f32.mrb[12].mxu1 }
 0x295   : > { %v914_v54 = vpop.f32.mrb[13].mxu1 }
 0x296   : > { %v916_v55 = vpop.f32.mrb[14].mxu1 }
 0x297   : > { %v935_v56 = vpack.c.bf16 %v916_v55, %v912_v53  ;;  %v918_v57 = vpop.f32.mrb[15].mxu1 }
 0x298   : > { %v936_v58 = vpack.c.bf16 %v918_v57, %v914_v54 }
 0x29a   : > { %949 = vmatprep.subr.bf16.mxu0 %v936_v58 }
 0x29b   : > { %950 = vmatpush1.bf16.msra.mxu0 %v935_v56 }
 0x29c   : > { %v922_v59 = vpop.f32.mrb[16].mxu1 }
 0x29d   : > { %v924_v60 = vpop.f32.mrb[17].mxu1 }
 0x29e   : > { %v926_v61 = vpop.f32.mrb[18].mxu1 }
 0x29f   : > { %v937_v62 = vpack.c.bf16 %v926_v61, %v922_v59  ;;  %v928_v63 = vpop.f32.mrb[19].mxu1 }
 0x2a0   : > { %v938_v3 = vpack.c.bf16 %v928_v63, %v924_v60 }
 0x2a2   : > { %951 = vmatprep.subr.bf16.mxu0 %v938_v3 }
 0x2a3   : > { %952 = vmatpush1.bf16.msra.mxu0 %v937_v62 }
 0x2a6   : > { %1269 = vmatmul.mubr.msk.bf16.vlgmr.msra.gmra.mrb[8].mxu0 %vm941_vm5, %v940_v5 }
 0x2a7   : > { %1067 = vmatprep.mubr.f32.mxu0 %v1548_v0 }
 0x379   : > { %v979_v0 = vpop.f32.mrb[8].mxu0 }
 0x37a   : > { %v981_v11 = vpop.f32.mrb[9].mxu0 }
 0x37b   : > { %v983_v13 = vpop.f32.mrb[10].mxu0  ;;  %1270 = vmatprep.subr.msk.mxu0 %vm996_vm6, %v981_v11 }
 0x37c   : > { %v984_v14 = vpop.f32.mrb[11].mxu0  ;;  %1271 = vmatpush1.msk.msra.mxu0 %vm996_vm6, %v979_v0 }
 0x37d   : > { %1272 = vmatmul.mubr.msk.f32.vlgmr.msra.gmra.mrb[6].mxu0 %vm838_vm4, %v986_v12 }
 0x450   : > { %v1069_v16 = vpop.f32.mrb[6].mxu0 }
 0x451   : > { %v1070_v17 = vadd.f32 %v1069_v16, %v991_v1  ;;  %v1071_v18 = vpop.f32.mrb[7].mxu0 }
 0x452   : > { %v1072_v19 = vadd.f32 %v1071_v18, %v991_v1 }
 0x453   : > { %v1087_v20 = vsub.f32 %v1070_v17, %v1085_v15 }
 0x454   : > { %v1088_v22 = vsub.f32 %v1072_v19, %v1085_v15 }
 0x455   : > { %v1094_v24 = vmul.f32 %v1092_v21, %v1087_v20 }
 0x456   : > { %v1095_v25 = vmul.f32 %v1092_v21, %v1088_v22 }
 0x457   : > { %v1100_v26 = vadd.f32 %v1098_v23, %v1094_v24 }
 0x458   : > { %v1101_v27 = vadd.f32 %v1098_v23, %v1095_v25 }
 0x459   : > { %v1103_v28 = vadd.f32 %v1100_v26, %v1783_v2 }
 0x45a   : > { %v1104_v29 = vadd.f32 %v1101_v27, %v1788_v4 }
 0x45c   : > { %v1107_v30 = vcombine.low %v1103_v28, %v1104_v29 }
 0x45e   : > { %1109 = vst [vmem:[%s403_s17] sm:$0xff] %v1107_v30 }
 0x45f   : > { %1469 = shalt.err (!%p1466_p13)
}
 0x460   : > { %s1470_s16 = scalar_lea.hbm %s1852_s19, 128  ;;  %s1474_s24 = scalar_lea.hbm %s1941_s9, 256 }
 0x461   : > { %p1471_p2 = scmp.ne.s32.totalorder %s1852_s19, %s1470_s16  ;;  %p1475_p4 = scmp.lt.u32.totalorder %s1852_s19, %s1941_s9 }
 0x462   : > { %p1476_p8 = scmp.lt.u32.totalorder %s1474_s24, %s1470_s16  ;;  %p1478_p10 = scmp.lt.u32.totalorder %s1470_s16, %s1852_s19 }
 0x463   : > { %p1472_p6 = pnand %p1471_p2, %p1942_p11 }
 0x464   : > { %p1477_p5 = por %p1476_p8, %p1475_p4 }
 0x465   : > { %p1473_p12 = pneg %p1472_p6 }
 0x466   : > { %p1479_p1 = por %p1478_p10, %p1477_p5 }
 0x468   : > { %p1480_p0 = pnand %p1479_p1, %p1473_p12 }
 0x46a   : > { %1483 = shalt.err (!%p1480_p0)
}
 0x46b   : > { %1315 = dma.vmem_to_hbm [thread:$0]  (%p1942_p11), %s1854_s22, 128, %s1852_s19, %s1111_s15  }
 0x46c PF: > { %s1943_s27 = sld [smem:[#allocation11_spill]]  ;;  %s1944_s30 = sld [smem:[#allocation13_spill]] }
 0x46d   : > { %s1945_s25 = sld [smem:[#allocation12_spill]] }
 0x472   : > { %s1139_s12 = sand.u32 1, %s1943_s27   ;;  %p1946_p9 = scmp.ne.s32.totalorder %s1944_s30, 0 }
 0x473   : > { %p1947_p3 = scmp.ge.s32.totalorder %s1945_s25, 2  ;;  %s1140_s23 = scalar_lea.sflag [#allocation4], %s1139_s12 }
 0x475   : > { %p1326_p7 = pnand %p1947_p3, %p1946_p9 }
 0x477   : > { %1517 = dma.done.wait (!%p1326_p7), %s1140_s23, 128  }
 0x478   : > { %1519 = vsyncadd (!%p1326_p7), %s1140_s23, 4294967168  ;;  %s26_s14 = sadd.s32 1, %s1945_s25   ;;  %s1948_s30 = smov %s1526_s10 }
 0x479   : > { %p23_p13 = scmp.ge.s32.totalorder %s26_s14, 4   ;;  %s1949_s10 = smov %s1530_s11 }
 0x47a   : > { %s1950_s11 = smov %s1724_s29  ;;  %s1951_s12 = smov %s1538_s13 }
 0x47b   : > { %s1952_s13 = smov %s1954_s28  ;;  %25 = sbr.rel (!%p23_p13) target bundleno = 9 (0x9), region = 111 }
 0x482   :  { %1145 = vsyncpa [#allocation3], 1 }
 0x483   :  { %1147 = vsyncpa [#allocation3 + $0x1], 1 }
 0x484   :  { %1148 = vsyncpa [#allocation6], 1 }
 0x485   :  { %1149 = vsyncpa [#allocation4], 1 }
 0x486   :  { %1151 = vsyncpa [#allocation4 + $0x1], 1 }

</bundles_post_ra>
